<compile_context>
chip_gen: v6e
topology: v6e:2x2x1
jax: 0.10.0
libtpu: 0.0.40
codegen_flags: <defaults>
</compile_context>

<pallas_src>
import jax
import jax.numpy as jnp
from jax.experimental import pallas as pl
from jax.experimental.pallas import tpu as pltpu


def _round_up(x, m):
    return ((x + m - 1) // m) * m


def _cdiv(a, b):
    return -(-a // b)


def _distribution_kernel(x_ref, w_ref, b_ref, logits_ref, logp_ref):
    """One batch tile: logits = x @ W + b ; log_probs = log_softmax(logits).

    x_ref:      (TB, D)  float32   (cast to bf16 in-kernel, MXU input)
    w_ref:      (D, A)   bfloat16  (resident)
    b_ref:      (1, A)   float32   (resident)
    logits_ref: (TB, A)  float32
    logp_ref:   (TB, A)  float32
    """
    # bf16 cast on the VPU just before the MXU dot; accumulate in f32.
    x = x_ref[...].astype(jnp.bfloat16)
    logits = jnp.dot(x, w_ref[...], preferred_element_type=jnp.float32) + b_ref[...]

    # Numerically-stable log-softmax, all f32.  Rows are independent, so the
    # unspecified rows of a masked partial batch block are harmless (their
    # stores are masked and never reach HBM).
    m = jnp.max(logits, axis=-1, keepdims=True)
    shifted = logits - m
    sum_exp = jnp.sum(jnp.exp(shifted), axis=-1, keepdims=True)

    logits_ref[...] = logits
    logp_ref[...] = shifted - jnp.log(sum_exp)


def _resident_spec(block_shape):
    """Constant-index (VMEM-resident) BlockSpec, single-buffered if supported."""
    index_map = lambda i: (0,) * len(block_shape)
    try:
        return pl.BlockSpec(block_shape, index_map, pipeline_mode=pl.Buffered(1))
    except Exception:  # older jax without pipeline_mode / Buffered(1)
        return pl.BlockSpec(block_shape, index_map)


def distribution_layer_forward(x, w, b, *, block_b=1024):
    """Fused Categorical policy head: returns (logits, log_probs).

    x: (B, D) float   w: (D, A) float   b: (A,) float
    """
    B, D = x.shape
    A = w.shape[1]

    # Parameters are tiny next to activations: cast W once to bf16 (MXU input,
    # half the resident VMEM); bias stays f32 for the f32 add.
    w_bf16 = w.astype(jnp.bfloat16)
    b_2d = b.astype(jnp.float32).reshape(1, A)

    # ---- Per-generation VMEM budget ------------------------------------
    try:
        vmem_cap = int(pltpu.get_tpu_info().vmem_capacity_bytes)
    except Exception:
        vmem_cap = 64 * 1024 * 1024            # v7x worst case
    budget = int(vmem_cap * 0.75)              # headroom for compiler scratch

    # ---- Batch-tile selection (multiple of 16: bf16 packs 16 sublanes) --
    A_lanes = _round_up(A, 128)                # physical lane footprint in VMEM
    per_row = 2 * D * 4 + 2 * 2 * A_lanes * 4  # dbl-buffered f32 x + 2 f32 outs
    fixed = 2 * D * A_lanes * 2 + 2 * 8 * A_lanes * 4  # weights + bias (<=2 bufs)
    tb_cap = max(16, ((budget - fixed - (4 << 20)) // per_row) // 16 * 16)

    TB = min(block_b, tb_cap)
    if B <= TB:
        if B >= 64:
            # >= 2 grid steps so the "parallel" axis can feed both v7x cores.
            TB = min(TB, _round_up(_cdiv(B, 2), 16))
        else:
            TB = B                             # single full-extent block
    else:
        TB = max(16, (TB // 16) * 16)
    nb = _cdiv(B, TB)                          # last block masked by Pallas

    vmem_used = TB * per_row + fixed
    vmem_limit = max(min(int(vmem_used * 1.5) + (2 << 20), budget),
                     min(16 << 20, budget))

    cost = pl.CostEstimate(
        flops=2 * B * D * A,
        transcendentals=B * A,                 # exp in the softmax
        bytes_accessed=4 * B * D + 2 * D * A + 4 * A + 2 * 4 * B * A,
    )

    logits, log_probs = pl.pallas_call(
        _distribution_kernel,
        out_shape=(
            jax.ShapeDtypeStruct((B, A), jnp.float32),
            jax.ShapeDtypeStruct((B, A), jnp.float32),
        ),
        grid=(nb,),
        in_specs=[
            pl.BlockSpec((TB, D), lambda i: (i, 0)),   # x: streamed over batch
            _resident_spec((D, A)),                    # W: resident in VMEM
            _resident_spec((1, A)),                    # b: resident in VMEM
        ],
        out_specs=(
            pl.BlockSpec((TB, A), lambda i: (i, 0)),
            pl.BlockSpec((TB, A), lambda i: (i, 0)),
        ),
        compiler_params=pltpu.CompilerParams(
            dimension_semantics=("parallel",),
            vmem_limit_bytes=vmem_limit),
        cost_estimate=cost,
    )(x, w_bf16, b_2d)

    return logits, log_probs


if __name__ == "__main__":
    # Small shapes consistent with the module: batch=10, input_size=32,
    # discrete action space with n=16 actions.
    B, D, A = 10, 32, 16

    key = jax.random.PRNGKey(0)
    kx, kw, kb = jax.random.split(key, 3)

    x = jax.random.normal(kx, (B, D), dtype=jnp.float32)
    # Deterministic synthetic parameters for the Linear(input_size, n) head.
    w = jax.random.normal(kw, (D, A), dtype=jnp.float32) * 0.05
    b = jax.random.normal(kb, (A,), dtype=jnp.float32) * 0.01

    logits, log_probs = distribution_layer_forward(x, w, b)
    logits = jax.block_until_ready(logits)
    log_probs = jax.block_until_ready(log_probs)

    # Reference 1: same bf16-input / f32-accumulate math in plain JAX.
    ref_logits = jnp.dot(x.astype(jnp.bfloat16), w.astype(jnp.bfloat16),
                         preferred_element_type=jnp.float32) + b[None, :]
    ref_logp = jax.nn.log_softmax(ref_logits, axis=-1)
    assert jnp.allclose(logits, ref_logits, atol=1e-4, rtol=1e-4)
    assert jnp.allclose(log_probs, ref_logp, atol=1e-4, rtol=1e-4)

    # Reference 2: full-precision semantics check (looser tol for bf16 matmul).
    f32_logits = x @ w + b[None, :]
    f32_logp = jax.nn.log_softmax(f32_logits, axis=-1)
    assert jnp.allclose(logits, f32_logits, atol=5e-2, rtol=5e-2)
    assert jnp.allclose(log_probs, f32_logp, atol=5e-2, rtol=5e-2)

    print("KERNEL_OK")
</pallas_src>

<mosaic_0001>
module attributes {stable_mosaic.version = 11 : i64} {
  func.func @_distribution_kernel(%arg0: i32, %arg1: memref<10x32xf32, #tpu.memory_space<vmem>>, %arg2: memref<32x16xbf16, #tpu.memory_space<vmem>>, %arg3: memref<1x16xf32, #tpu.memory_space<vmem>>, %arg4: memref<10x16xf32, #tpu.memory_space<vmem>>, %arg5: memref<10x16xf32, #tpu.memory_space<vmem>>) attributes {dimension_semantics = [#tpu.dimension_semantics<parallel>], iteration_bounds = array<i64: 1>, scalar_prefetch = 0 : i64, scratch_operands = 0 : i64, tpu.core_type = #tpu.core_type<tc>, window_params = [{transform_indices = @transform_0, window_bounds = array<i64: 10, 32>}, {pipeline_mode = #tpu.pipeline_mode<synchronous>, transform_indices = @transform_1, window_bounds = array<i64: 32, 16>}, {pipeline_mode = #tpu.pipeline_mode<synchronous>, transform_indices = @transform_2, window_bounds = array<i64: 1, 16>}, {transform_indices = @transform_3, window_bounds = array<i64: 10, 16>}, {transform_indices = @transform_4, window_bounds = array<i64: 10, 16>}]} {
    %c0 = arith.constant 0 : index
    %c0_0 = arith.constant 0 : index
    %0 = vector.load %arg1[%c0, %c0_0] : memref<10x32xf32, #tpu.memory_space<vmem>>, vector<10x32xf32>
    %1 = arith.truncf %0 : vector<10x32xf32> to vector<10x32xbf16>
    %c0_1 = arith.constant 0 : index
    %c0_2 = arith.constant 0 : index
    %2 = vector.load %arg2[%c0_1, %c0_2] : memref<32x16xbf16, #tpu.memory_space<vmem>>, vector<32x16xbf16>
    %cst = arith.constant dense<0.000000e+00> : vector<10x16xf32>
    %3 = tpu.matmul %1, %2, %cst {dimension_numbers = #tpu.dot_dimension_numbers<[1], [0], [0], [1], [0, 0, 1, 1], [], []>} : vector<10x32xbf16>, vector<32x16xbf16>, vector<10x16xf32> -> vector<10x16xf32>
    %c0_3 = arith.constant 0 : index
    %c0_4 = arith.constant 0 : index
    %4 = vector.load %arg3[%c0_3, %c0_4] : memref<1x16xf32, #tpu.memory_space<vmem>>, vector<1x16xf32>
    %5 = vector.broadcast %4 : vector<1x16xf32> to vector<10x16xf32>
    %6 = arith.addf %3, %5 : vector<10x16xf32>
    %cst_5 = arith.constant dense<0xFF800000> : vector<10xf32>
    %7 = vector.multi_reduction <maximumf>, %6, %cst_5 [1] : vector<10x16xf32> to vector<10xf32>
    %8 = vector.shape_cast %7 : vector<10xf32> to vector<10x1xf32>
    %9 = vector.broadcast %8 : vector<10x1xf32> to vector<10x16xf32>
    %10 = arith.subf %6, %9 : vector<10x16xf32>
    %11 = math.exp %10 : vector<10x16xf32>
    %cst_6 = arith.constant dense<0.000000e+00> : vector<10xf32>
    %12 = vector.multi_reduction <add>, %11, %cst_6 [1] : vector<10x16xf32> to vector<10xf32>
    %13 = vector.shape_cast %12 : vector<10xf32> to vector<10x1xf32>
    %c0_7 = arith.constant 0 : index
    %c0_8 = arith.constant 0 : index
    %14 = vector.load %arg4[%c0_7, %c0_8] : memref<10x16xf32, #tpu.memory_space<vmem>>, vector<10x16xf32>
    tpu.vector_store %arg4[%c0_7, %c0_8], %6 {strides = array<i32>} : memref<10x16xf32, #tpu.memory_space<vmem>>, vector<10x16xf32>,
    %15 = math.log %13 : vector<10x1xf32>
    %16 = vector.broadcast %15 : vector<10x1xf32> to vector<10x16xf32>
    %17 = arith.subf %10, %16 : vector<10x16xf32>
    %c0_9 = arith.constant 0 : index
    %c0_10 = arith.constant 0 : index
    %18 = vector.load %arg5[%c0_9, %c0_10] : memref<10x16xf32, #tpu.memory_space<vmem>>, vector<10x16xf32>
    tpu.vector_store %arg5[%c0_9, %c0_10], %17 {strides = array<i32>} : memref<10x16xf32, #tpu.memory_space<vmem>>, vector<10x16xf32>,
    return
  }
  func.func @transform_0(%arg0: i32) -> (i32, i32) {
    %c0_i32 = arith.constant 0 : i32
    %c0_i32_0 = arith.constant 0 : i32
    return %arg0, %c0_i32 : i32, i32
  }
  func.func @transform_1(%arg0: i32) -> (i32, i32) {
    %c0_i32 = arith.constant 0 : i32
    %c0_i32_0 = arith.constant 0 : i32
    %c0_i32_1 = arith.constant 0 : i32
    return %c0_i32, %c0_i32_0 : i32, i32
  }
  func.func @transform_2(%arg0: i32) -> (i32, i32) {
    %c0_i32 = arith.constant 0 : i32
    %c0_i32_0 = arith.constant 0 : i32
    %c0_i32_1 = arith.constant 0 : i32
    return %c0_i32, %c0_i32_0 : i32, i32
  }
  func.func @transform_3(%arg0: i32) -> (i32, i32) {
    %c0_i32 = arith.constant 0 : i32
    %c0_i32_0 = arith.constant 0 : i32
    return %arg0, %c0_i32 : i32, i32
  }
  func.func @transform_4(%arg0: i32) -> (i32, i32) {
    %c0_i32 = arith.constant 0 : i32
    %c0_i32_0 = arith.constant 0 : i32
    return %arg0, %c0_i32 : i32, i32
  }
}

</mosaic_0001>

<bundles_post_ra>
// kernel: tpu_custom_call.1
= control target key start
LH: loop header
LB: loop body
LE: loop exit
PB: predicated region body
PF: predicated region fallthrough
CT: control target
= control target key end

     0   :  { %10 = vsyncpa [#allocation3], 0  ;;  %v227_v1 = vmov 0.0   ;;  %vm228_vm0 = vmmov 0   ;;  %s287_s0 = inlined_call_operand.vmem [shape: f32[10,32], index: 0, kind: input, shape index: {}]   ;;  %s288_s1 = inlined_call_operand.vmem [shape: bf16[32,16], index: 1, kind: input, shape index: {}]   ;;  %s289_s2 = inlined_call_operand.vmem [shape: f32[1,16], index: 2, kind: input, shape index: {}]   ;;  %s290_s3 = inlined_call_operand.hbm [shape: f32[10,16], index: 3, kind: output, shape index: {0}]   ;;  %s291_s4 = inlined_call_operand.hbm [shape: f32[10,16], index: 4, kind: output, shape index: {1}]  }
   0x1   :  { %v173_v0 = vld [vmem:[%s288_s1 + $0x8] sm:$0xff]   ;;  %159 = vmatprep.subr.bf16.mxu0 %v227_v1  ;;  %v174_v2 = vld [vmem:[%s288_s1] sm:$0xff]   ;;  %163 = vmatprep.mubr.msk.bf16.mxu0 %vm228_vm0, %v227_v1 }
   0x2   :  { %160 = vmatpush3.bf16.msra.mxu0 %v173_v0  ;;  %v19_v3 = vld [vmem:[%s287_s0] sm:$0xff]  ;;  %v20_v4 = vld [vmem:[%s287_s0 + $0x8] sm:$0x3] }
   0x3   :  { %161 = vmatprep.subr.bf16.mxu0 %v227_v1 }
   0x4   :  { %11 = vsyncpa [#allocation5], 0  ;;  %v21_v5 = vpack.c.bf16 %v20_v4, %v19_v3  ;;  %vm45_vm1 = vcmask 261120   ;;  %v152_v6 = vld [vmem:[%s289_s2] ss:$0 sm:$0xff]  ;;  %vm90_vm2 = vcmask 130048  }
   0x5   :  { %vm94_vm3 = vcmask 123904   ;;  %s229_s0 = smov [#allocation2]  }
   0x6   :  { %162 = vmatpush3.bf16.msra.mxu0 %v174_v2  ;;  %s125_s1 = sshll.u32 %s229_s0, 4  ;;  %s126_s1 = int_to_ptr.vmem [resolvable:$true] %s125_s1 }
   0x7   :  { %s183_s2 = scalar_lea.vmem %s126_s1, 256  ;;  %p188_p1 = scmp.lt.s32.totalorder %s126_s1, %s126_s1 }
   0x8   :  { %p184_p0 = scmp.ne.s32.totalorder %s126_s1, %s183_s2  ;;  %p189_p2 = scmp.lt.s32.totalorder %s183_s2, %s183_s2 }
   0x9   :  { %164 = vmatmul.mubr.msk.bf16.vlgmr.msra.gmra.mxu0 %vm45_vm1, %v21_v5 }
   0xa   :  { %p190_p3 = por %p189_p2, %p188_p1 }
   0xc   :  { %p191_p4 = pnand %p190_p3, %p184_p0 }
  0xc9   :  { %v83_v7 = vpop.f32.mrf.mxu0 }
  0xca   :  { %v84_v8 = vadd.f32 %v152_v6, %v83_v7 }
  0xcb   :  { %v165_v9 = vpop.f32.mrf.mxu0 }
  0xcc   :  { %v91_v10 = vsel %vm90_vm2, %v84_v8, -inf  ;;  %110 = vst.msk [vmem:[#allocation2] sm:$0xff] %vm90_vm2, %v84_v8 }
  0xcd   :  { %92 = vmax.xlane.f32.xlu0 %v91_v10  ;;  %v86_v11 = vpop.f32.mrf.mxu0 }
  0xce   :  { %v87_v12 = vadd.f32 %v152_v6, %v86_v11 }
  0xcf   :  { %v166_v13 = vpop.f32.mrf.mxu0 }
  0xd0   :  { %v95_v14 = vsel %vm94_vm3, %v87_v12, -inf  ;;  %111 = vst.msk [vmem:[#allocation2 + $0x8] sm:$0x3] %vm94_vm3, %v87_v12 }
  0xd1   :  { %96 = vmax.xlane.f32.xlu0 %v95_v14 }
 0x156   :  { %v93_v15 = vpop.xlane.xlu0 %92 }
 0x157   :  { %v98_v16 = vsub.f32 %v84_v8, %v93_v15 }
 0x159   :  { %v100_v17 = vmul.f32 1.442695, %v98_v16 }
 0x15a   :  { %v97_v18 = vpop.xlane.xlu0 %96 }
 0x15b   :  { %175 = vpow2.f32 %v100_v17  ;;  %v99_v19 = vsub.f32 %v87_v12, %v97_v18 }
 0x15d   :  { %v102_v20 = vmul.f32 1.442695, %v99_v19 }
 0x15f   :  { %177 = vpow2.f32 %v102_v20 }
 0x168   :  { %v176_v21 = vpop.eup %175 }
 0x169   :  { %v104_v22 = vsel %vm90_vm2, %v176_v21, 0.0 }
 0x16a   :  { %105 = vadd.xlane.f32.xlu1 %v104_v22 }
 0x16c   :  { %v178_v23 = vpop.eup %177 }
 0x16d   :  { %v107_v24 = vsel %vm94_vm3, %v178_v23, 0.0 }
 0x16e   :  { %108 = vadd.xlane.f32.xlu1 %v107_v24 }
 0x16f   :  { %194 = shalt.err (!%p191_p4)
}
 0x170   :  { %s230_s25 = smov 128   ;;  %s231_s26 = smov 8  }
 0x171   :  { %131 = dma.vmem_to_hbm [thread:$0]  %s126_s1, 256, %s290_s3, [#allocation3], %s230_s25, %s230_s25, %s231_s26  }
 0x172   :  { %s232_s29 = smov [#allocation4]  }
 0x173   :  { %s137_s30 = sshll.u32 %s232_s29, 4  ;;  %s138_s30 = int_to_ptr.vmem [resolvable:$true] %s137_s30 }
 0x174   :  { %s203_s5 = scalar_lea.vmem %s138_s30, 256  ;;  %p208_p6 = scmp.lt.s32.totalorder %s138_s30, %s138_s30 }
 0x175   :  { %p204_p5 = scmp.ne.s32.totalorder %s138_s30, %s203_s5  ;;  %p209_p7 = scmp.lt.s32.totalorder %s203_s5, %s203_s5 }
 0x177   :  { %p210_p8 = por %p209_p7, %p208_p6 }
 0x179   :  { %p211_p9 = pnand %p210_p8, %p204_p5 }
 0x1f3   :  { %v106_v25 = vpop.xlane.xlu1 %105 }
 0x1f4   :  { %179 = vlog2.f32 %v106_v25 }
 0x1f7   :  { %v109_v26 = vpop.xlane.xlu1 %108 }
 0x1f8   :  { %181 = vlog2.f32 %v109_v26 }
 0x201   :  { %v180_v27 = vpop.eup %179 }
 0x202   :  { %v113_v28 = vmul.f32 0.6931472, %v180_v27 }
 0x204   :  { %v116_v29 = vsub.f32 %v98_v16, %v113_v28 }
 0x205   :  { %v182_v30 = vpop.eup %181 }
 0x206   :  { %118 = vst.msk [vmem:[#allocation4] sm:$0xff] %vm90_vm2, %v116_v29  ;;  %v115_v31 = vmul.f32 0.6931472, %v182_v30 }
 0x208   :  { %v117_v32 = vsub.f32 %v99_v19, %v115_v31 }
 0x20a   :  { %119 = vst.msk [vmem:[#allocation4 + $0x8] sm:$0x3] %vm94_vm3, %v117_v32 }
 0x20b   :  { %214 = shalt.err (!%p211_p9)
}
 0x20c   :  { %143 = dma.vmem_to_hbm [thread:$0]  %s138_s30, 256, %s291_s4, [#allocation5], %s230_s25, %s230_s25, %s231_s26  }
 0x20d   :  { %223 = dma.done.wait [#allocation3], 256  }
 0x20e   :  { %224 = vsyncadd [#allocation3], 4294967040 }
 0x20f   :  { %225 = dma.done.wait [#allocation5], 256  }
 0x210   :  { %226 = vsyncadd [#allocation5], 4294967040 }
 0x211   :  { %150 = vsyncpa [#allocation3], 1 }
 0x212   :  { %151 = vsyncpa [#allocation5], 1 }

</bundles_post_ra>
